<compile_context>
chip_gen: v7x
topology: tpu7x:2x2x1
jax: 0.10.0
libtpu: 0.0.40
codegen_flags: <defaults>
</compile_context>

<pallas_src>
import functools

import jax
import jax.numpy as jnp
from jax.experimental import pallas as pl
from jax.experimental.pallas import tpu as pltpu


_ROW_ALIGN = 32  # multiple of 8 (f32) and 16 (bf16) sublane packing


def _focal_loss_kernel(logits_ref, targets_ref, out_ref, *,
                       gamma, n_total, block_n):
    i = pl.program_id(0)

    x = logits_ref[...].astype(jnp.float32)          # (TN, C), f32 compute
    t = targets_ref[...]                             # (TN, 1) int32

    # Gather logit at the target class via iota + masked sum (TPU-friendly).
    # Computed alongside the row max (both only read x once from VMEM).
    col = jax.lax.broadcasted_iota(jnp.int32, x.shape, dimension=1)     # (TN, C)
    sel = jnp.sum(jnp.where(col == t, x, 0.0), axis=-1, keepdims=True)  # (TN, 1)

    # Numerically-stable log-sum-exp per row.
    m = jnp.max(x, axis=-1, keepdims=True)                              # (TN, 1)
    lse = m + jnp.log(jnp.sum(jnp.exp(x - m), axis=-1, keepdims=True))  # (TN, 1)

    ce = lse - sel                                    # per-sample cross-entropy
    pt = jnp.exp(-ce)
    u = jnp.maximum(1.0 - pt, 0.0)                    # clamp tiny negatives

    # (1 - pt)**gamma
    if float(gamma) == int(gamma) and int(gamma) >= 0:
        # Integer gamma -> pure-VPU exponentiation by squaring (no EUP pow).
        e = int(gamma)
        w = None
        base = u
        while e > 0:
            if e & 1:
                w = base if w is None else w * base
            e >>= 1
            if e:
                base = base * base
        if w is None:                                 # gamma == 0
            w = jnp.ones_like(u)
    else:
        # Guard u == 0 so pow (exp(gamma*log(u))) never sees log(0).
        safe_u = jnp.where(u > 0.0, u, 1.0)
        w = jnp.where(u > 0.0,
                      jnp.exp(jnp.float32(gamma) * jnp.log(safe_u)),
                      0.0)

    focal = w * ce                                    # (TN, 1); alpha folded into wrapper

    # Mask rows beyond the true batch size (last partial tile padding).
    # Keep this mask at the final value: jnp.where does not propagate NaN /
    # Inf from the unselected branch, so garbage in padded rows is harmless.
    row = jax.lax.broadcasted_iota(jnp.int32, focal.shape, dimension=0) + i * block_n
    focal = jnp.where(row < n_total, focal, 0.0)

    # Per-tile partial sum, written to this step's own lane-dense (8, 128)
    # output block (unmasked vst; "parallel" axis -> both v7x TensorCores).
    partial = jnp.sum(focal, axis=0, keepdims=True)            # (1, 1)
    out_ref[...] = jnp.broadcast_to(partial, out_ref.shape)    # (8, 128)


def _vmem_capacity_bytes():
    try:
        return int(pltpu.get_tpu_info().vmem_capacity_bytes)
    except Exception:
        return 64 * 1024 * 1024      # conservative default (v7x has the least VMEM)


def focal_loss(logits, targets, alpha=0.5, gamma=3.0, block_rows=None):
    """logits: (N, C) float32 or bfloat16, targets: (N,) int -> scalar float32.

    For bandwidth-bound large-C shapes on v5e/v6e, feed bf16 logits from the
    caller: the kernel upcasts to f32 internally, so bf16 is a pure HBM win.
    """
    n, c = logits.shape
    targets2d = targets.reshape(n, 1).astype(jnp.int32)

    # ---- Generation / dtype aware tile sizing -------------------------------
    vmem_cap = _vmem_capacity_bytes()                           # 64 MiB (v7x) .. 128 MiB
    vmem_limit = int(min((vmem_cap * 3) // 4, 96 * 1024 * 1024))
    itemsize = logits.dtype.itemsize
    # Per-row VMEM cost: 2 double-buffered input tiles at native dtype plus
    # ~4 f32-sized (TN, C) live temporaries (upcast, exp, masked gather, ...).
    per_row_bytes = 2 * c * itemsize + 4 * c * 4
    usable = max(vmem_limit - 4 * 1024 * 1024, 1 * 1024 * 1024)  # Mosaic scratch headroom
    tn = usable // per_row_bytes
    n_pad = ((n + _ROW_ALIGN - 1) // _ROW_ALIGN) * _ROW_ALIGN
    tn = max(_ROW_ALIGN, min((tn // _ROW_ALIGN) * _ROW_ALIGN, n_pad))
    if block_rows is not None:
        tn = max(_ROW_ALIGN, (int(block_rows) // _ROW_ALIGN) * _ROW_ALIGN)
    grid_n = pl.cdiv(n, tn)
    # -------------------------------------------------------------------------

    kernel = functools.partial(
        _focal_loss_kernel,
        gamma=float(gamma), n_total=n, block_n=tn,
    )

    cost = pl.CostEstimate(
        flops=10 * n * c,
        transcendentals=n * c + 2 * n,              # exp in lse, exp(-ce), log
        bytes_accessed=n * c * itemsize + n * 4 + grid_n * 8 * 128 * 4,
    )

    partials = pl.pallas_call(
        kernel,
        out_shape=jax.ShapeDtypeStruct((grid_n * 8, 128), jnp.float32),
        grid=(grid_n,),
        in_specs=[
            pl.BlockSpec((tn, c), lambda i: (i, 0)),
            pl.BlockSpec((tn, 1), lambda i: (i, 0)),
        ],
        out_specs=pl.BlockSpec((8, 128), lambda i: (i, 0)),     # per-tile partial block
        compiler_params=pltpu.CompilerParams(
            dimension_semantics=("parallel",),                  # no carried state
            vmem_limit_bytes=vmem_limit,
        ),
        cost_estimate=cost,
    )(logits, targets2d)

    # Each (8, 128) block is a broadcast copy of its tile's partial sum.
    per_tile = partials.reshape(grid_n, 8, 128)[:, 0, 0]        # (grid_n,)
    return (jnp.sum(per_tile) * (float(alpha) / n)).astype(jnp.float32)


def focal_loss_ref(logits, targets, alpha=0.5, gamma=3.0):
    """Pure-JAX reference mirroring torch semantics."""
    logits = logits.astype(jnp.float32)
    lse = jax.nn.logsumexp(logits, axis=-1)
    sel = jnp.take_along_axis(logits, targets[:, None], axis=-1)[:, 0]
    ce = lse - sel
    pt = jnp.exp(-ce)
    return jnp.mean(alpha * (1.0 - pt) ** gamma * ce)


if __name__ == "__main__":
    key = jax.random.PRNGKey(0)
    k1, k2 = jax.random.split(key)

    # Small shapes: 100 logit rows over 32 classes.  block_rows=32 forces a
    # 4-step grid with a partial last tile (4 valid rows), exercising the
    # per-tile partial-sum path and the padded-row masking.
    N, C = 100, 32
    logits = jax.random.normal(k1, (N, C), dtype=jnp.float32)
    targets = jax.random.randint(k2, (N,), 0, C, dtype=jnp.int32)

    # float32, multi-tile grid
    out = focal_loss(logits, targets, alpha=0.5, gamma=3.0, block_rows=32)
    out = jax.block_until_ready(out)
    ref = focal_loss_ref(logits, targets, alpha=0.5, gamma=3.0)
    assert jnp.allclose(out, ref, rtol=1e-5, atol=1e-6), (out, ref)

    # float32, auto (VMEM-aware) tile sizing -> single tile
    out_auto = focal_loss(logits, targets, alpha=0.5, gamma=3.0)
    out_auto = jax.block_until_ready(out_auto)
    assert jnp.allclose(out_auto, ref, rtol=1e-5, atol=1e-6), (out_auto, ref)

    # bfloat16 storage path (kernel upcasts to f32 internally)
    logits_bf16 = logits.astype(jnp.bfloat16)
    out_bf16 = focal_loss(logits_bf16, targets, alpha=0.5, gamma=3.0, block_rows=32)
    out_bf16 = jax.block_until_ready(out_bf16)
    ref_bf16 = focal_loss_ref(logits_bf16.astype(jnp.float32), targets,
                              alpha=0.5, gamma=3.0)
    assert jnp.allclose(out_bf16, ref_bf16, rtol=1e-5, atol=1e-6), (out_bf16, ref_bf16)

    # non-integer gamma path (guarded pow branch)
    out_g = focal_loss(logits, targets, alpha=0.25, gamma=2.5, block_rows=32)
    out_g = jax.block_until_ready(out_g)
    ref_g = focal_loss_ref(logits, targets, alpha=0.25, gamma=2.5)
    assert jnp.allclose(out_g, ref_g, rtol=1e-5, atol=1e-6), (out_g, ref_g)

    print("KERNEL_OK")
</pallas_src>

<mosaic_0001>
module attributes {stable_mosaic.version = 11 : i64} {
  func.func @_focal_loss_kernel(%arg0: i32, %arg1: memref<32x32xf32, #tpu.memory_space<vmem>>, %arg2: memref<32x1xi32, #tpu.memory_space<vmem>>, %arg3: memref<8x128xf32, #tpu.memory_space<vmem>>) attributes {dimension_semantics = [#tpu.dimension_semantics<parallel>], iteration_bounds = array<i64: 4>, scalar_prefetch = 0 : i64, scratch_operands = 0 : i64, tpu.core_type = #tpu.core_type<tc>, window_params = [{transform_indices = @transform_0, window_bounds = array<i64: 32, 32>}, {transform_indices = @transform_1, window_bounds = array<i64: 32, 1>}, {transform_indices = @transform_2, window_bounds = array<i64: 8, 128>}]} {
    %c0 = arith.constant 0 : index
    %c0_0 = arith.constant 0 : index
    %0 = vector.load %arg1[%c0, %c0_0] : memref<32x32xf32, #tpu.memory_space<vmem>>, vector<32x32xf32>
    %c0_1 = arith.constant 0 : index
    %c0_2 = arith.constant 0 : index
    %1 = vector.load %arg2[%c0_1, %c0_2] : memref<32x1xi32, #tpu.memory_space<vmem>>, vector<32x1xi32>
    %2 = tpu.iota {dimensions = array<i32: 1>} : vector<32x32xi32>
    %3 = vector.broadcast %1 : vector<32x1xi32> to vector<32x32xi32>
    %4 = arith.cmpi eq, %2, %3 : vector<32x32xi32>
    %cst = arith.constant 0.000000e+00 : f32
    %5 = vector.broadcast %cst : f32 to vector<32x32xf32>
    %6 = arith.select %4, %0, %5 : vector<32x32xi1>, vector<32x32xf32>
    %cst_3 = arith.constant dense<0.000000e+00> : vector<32xf32>
    %7 = vector.multi_reduction <add>, %6, %cst_3 [1] : vector<32x32xf32> to vector<32xf32>
    %8 = vector.shape_cast %7 : vector<32xf32> to vector<32x1xf32>
    %cst_4 = arith.constant dense<0xFF800000> : vector<32xf32>
    %9 = vector.multi_reduction <maximumf>, %0, %cst_4 [1] : vector<32x32xf32> to vector<32xf32>
    %10 = vector.shape_cast %9 : vector<32xf32> to vector<32x1xf32>
    %11 = vector.broadcast %10 : vector<32x1xf32> to vector<32x32xf32>
    %12 = arith.subf %0, %11 : vector<32x32xf32>
    %13 = math.exp %12 : vector<32x32xf32>
    %cst_5 = arith.constant dense<0.000000e+00> : vector<32xf32>
    %14 = vector.multi_reduction <add>, %13, %cst_5 [1] : vector<32x32xf32> to vector<32xf32>
    %15 = vector.shape_cast %14 : vector<32xf32> to vector<32x1xf32>
    %16 = math.log %15 : vector<32x1xf32>
    %17 = arith.addf %10, %16 : vector<32x1xf32>
    %18 = arith.subf %17, %8 : vector<32x1xf32>
    %cst_6 = arith.constant 0.000000e+00 : f32
    %19 = vector.broadcast %cst_6 : f32 to vector<32x1xf32>
    %20 = arith.subf %19, %18 : vector<32x1xf32>
    %21 = math.exp %20 : vector<32x1xf32>
    %cst_7 = arith.constant 1.000000e+00 : f32
    %22 = vector.broadcast %cst_7 : f32 to vector<32x1xf32>
    %23 = arith.subf %22, %21 : vector<32x1xf32>
    %cst_8 = arith.constant 0.000000e+00 : f32
    %24 = vector.broadcast %cst_8 : f32 to vector<32x1xf32>
    %25 = arith.maximumf %23, %24 : vector<32x1xf32>
    %26 = arith.mulf %25, %25 : vector<32x1xf32>
    %27 = arith.mulf %25, %26 : vector<32x1xf32>
    %28 = arith.mulf %27, %18 : vector<32x1xf32>
    %29 = tpu.iota {dimensions = array<i32: 0>} : vector<32x1xi32>
    %c32_i32 = arith.constant 32 : i32
    %30 = arith.muli %arg0, %c32_i32 : i32
    %31 = vector.broadcast %30 : i32 to vector<32x1xi32>
    %32 = arith.addi %29, %31 : vector<32x1xi32>
    %c100_i32 = arith.constant 100 : i32
    %33 = vector.broadcast %c100_i32 : i32 to vector<32x1xi32>
    %34 = arith.cmpi slt, %32, %33 : vector<32x1xi32>
    %cst_9 = arith.constant 0.000000e+00 : f32
    %35 = vector.broadcast %cst_9 : f32 to vector<32x1xf32>
    %36 = arith.select %34, %28, %35 : vector<32x1xi1>, vector<32x1xf32>
    %cst_10 = arith.constant dense<0.000000e+00> : vector<1xf32>
    %37 = vector.multi_reduction <add>, %36, %cst_10 [0] : vector<32x1xf32> to vector<1xf32>
    %38 = vector.shape_cast %37 : vector<1xf32> to vector<1x1xf32>
    %39 = vector.shape_cast %38 : vector<1x1xf32> to vector<1x1xf32>
    %40 = vector.broadcast %39 : vector<1x1xf32> to vector<8x128xf32>
    %c0_11 = arith.constant 0 : index
    %c0_12 = arith.constant 0 : index
    %41 = vector.load %arg3[%c0_11, %c0_12] : memref<8x128xf32, #tpu.memory_space<vmem>>, vector<8x128xf32>
    tpu.vector_store %arg3[%c0_11, %c0_12], %40 {strides = array<i32>} : memref<8x128xf32, #tpu.memory_space<vmem>>, vector<8x128xf32>,
    return
  }
  func.func @transform_0(%arg0: i32) -> (i32, i32) {
    %c0_i32 = arith.constant 0 : i32
    %c0_i32_0 = arith.constant 0 : i32
    return %arg0, %c0_i32 : i32, i32
  }
  func.func @transform_1(%arg0: i32) -> (i32, i32) {
    %c0_i32 = arith.constant 0 : i32
    %c0_i32_0 = arith.constant 0 : i32
    return %arg0, %c0_i32 : i32, i32
  }
  func.func @transform_2(%arg0: i32) -> (i32, i32) {
    %c0_i32 = arith.constant 0 : i32
    %c0_i32_0 = arith.constant 0 : i32
    return %arg0, %c0_i32 : i32, i32
  }
}

</mosaic_0001>

<bundles_post_ra>
// kernel: tpu_custom_call.1
= control target key start
LH: loop header
LB: loop body
LE: loop exit
PB: predicated region body
PF: predicated region fallthrough
CT: control target
= control target key end

     0   :  { %7 = vsyncpa [#allocation3], 0  ;;  %s742_s0 = inlined_call_operand.vmem [shape: f32[100,32], index: 0, kind: input, shape index: {}]   ;;  %s743_s1 = inlined_call_operand.vmem [shape: s32[100,1], index: 1, kind: input, shape index: {}]   ;;  %s744_s2 = inlined_call_operand.hbm [shape: f32[32,128], index: 2, kind: output, shape index: {}]  }
   0x1   :  { %9 = vsyncpa [#allocation3 + $0x1], 0  ;;  %s608_s9 = smov 0   ;;  %s610_s10 = smov 0  }
   0x2   :  { %s612_s11 = smov 0   ;;  %s614_s12 = smov 0  }
   0x3 LB: > { %s629_s13 = sadd.s32 4294967295, %s589_s12   ;;  %s447_s14 = sadd.s32 4294967294, %s589_s12   ;;  %s589_s12 = sphi %s614_s12, %s750_s12   ;;  %s585_s11 = sphi %s612_s11, %s749_s11   ;;  %s581_s10 = sphi %s610_s10, %s748_s10   ;;  %s577_s9 = sphi %s608_s9, %s747_s9  }
   0x4   : > { %s633_s15 = sadd.s32 1, %s589_s12   ;;  %s74_s16 = sadd.s32 1, %s585_s11 }
   0x5   : > { %s71_s17 = ssub.s32 %s589_s12, %s633_s15  ;;  %p84_p0 = scmp.ne.s32.totalorder %s585_s11, %s581_s10 }
   0x6   : > { %p72_p1 = scmp.eq.s32.totalorder %s71_s17, 0  ;;  %p85_p2 = scmp.eq.s32.totalorder %s629_s13, 3 }
   0x7   : > { %p90_p3 = scmp.ne.s32.totalorder %s581_s10, %s577_s9  ;;  %p91_p4 = scmp.eq.s32.totalorder %s447_s14, 3 }
   0x8   : > { %s644_s18 = scalar_select %p72_p1, %s585_s11, %s74_s16  }
   0x9   : > { %p646_p5 = por %p85_p2, %p84_p0  ;;  %p650_p6 = por %p91_p4, %p90_p3 }
   0xa   : > { %p450_p7 = scmp.ge.s32.totalorder %s589_s12, 1  ;;  %p143_p8 = scmp.lt.s32.totalorder %s589_s12, 5 }
   0xc   : > { %p144_p9 = pnand %p450_p7, %p143_p8 }
   0xd   : > { %s452_s21 = sshll.u32 (!%p144_p9), %s629_s13, 2  ;;  %v591_v0 = vmov (!%p144_p9), 0   ;;  %vm236_vm0 = vcmask (!%p144_p9), 261120   ;;  %v214_v26 = vlaneseq (!%p144_p9)  ;;  %s456_s29 = sshll.u32 (!%p144_p9), %s629_s13, 5 }
   0xe   : > { %147 = sbr.rel (%p144_p9) target bundleno = 406 (0x196), region = 28  ;;  %p183_p10 = scmp.lt.s32.totalorder (!%p144_p9), %s452_s21, 12  ;;  %502 = vset.pattern.permute.xlu1 (!%p144_p9), %v591_v0  ;;  %501 = vset.pattern.permute.xlu0 (!%p144_p9), %v591_v0 }
   0xf   : > { %v215_v27 = vand.u32 (!%p144_p9), 127, %v214_v26  ;;  %s175_s30 = sand.u32 (!%p144_p9), 1, %s581_s10   ;;  %s458_s4 = sshll.u32 (!%p144_p9), %s629_s13, 7 }
  0x10   : > { %s451_s3 = sshll.u32 (!%p144_p9), %s175_s30, 3  ;;  %s700_s14 = scalar_lea.hbm (!%p144_p9), %s744_s2, %s458_s4 }
  0x11   : > { %s177_s5 = scalar_lea.vmem (!%p144_p9), [#allocation2], %s451_s3  ;;  %s363_s16 = scalar_lea.sflag (!%p144_p9), [#allocation3], %s175_s30 }
  0x12   : > { %s376_s6 = sshll.u32 (!%p144_p9), %s177_s5, 4  ;;  %s592_s13 = smov (!%p144_p9), [#allocation2]   ;;  %s702_s6 = int_to_ptr.vmem [resolvable:$true] %s376_s6 }
  0x13   : > { %s527_s17 = scalar_lea.vmem (!%p144_p9), %s702_s6, 128 }
  0x14   : > { %p528_p11 = scmp.ne.s32.totalorder (!%p144_p9), %s702_s6, %s527_s17 }
  0x15   : > { %s752_s21 = smov (!%p183_p10, %s452_s21), 12 }
  0x16   : > { %s453_s22 = sshll.u32 %s752_s21, 3  ;;  %p529_p12 = pnand %p528_p11, %p646_p5 }
  0x17   : > { %s186_s25 = scalar_lea.vmem %s742_s0, %s453_s22  ;;  %s200_s28 = scalar_lea.vmem %s743_s1, %s453_s22 }
  0x18   : > { %v206_v1 = vld [vmem:[%s186_s25] sm:$0xff]  ;;  %v208_v2 = vld [vmem:[%s186_s25 + $0x10] sm:$0xff]  ;;  %v207_v3 = vld [vmem:[%s186_s25 + $0x8] sm:$0xff]  ;;  %p530_p13 = pneg %p529_p12  ;;  %s531_s21 = sshll.u32 %s592_s13, 4  ;;  %s532_s21 = int_to_ptr.vmem [resolvable:$false] %s531_s21 }
  0x19   : > { %v249_v4 = vsel %vm236_vm0, %v206_v1, -inf  ;;  %v255_v5 = vsel %vm236_vm0, %v208_v2, -inf  ;;  %v662_v6 = vld [vmem:[%s186_s25 + $0x18] sm:$0xff]  ;;  %v252_v7 = vsel %vm236_vm0, %v207_v3, -inf  ;;  %v211_v9 = vld [vmem:[%s200_s28 + $0x8] sm:$0xff]  ;;  %v212_v10 = vld [vmem:[%s200_s28 + $0x10] sm:$0xff]  ;;  %p534_p0 = scmp.lt.s32.totalorder %s702_s6, %s532_s21 }
  0x1a   : > { %250 = vmax.xlane.f32.xlu0 %v249_v4  ;;  %256 = vmax.xlane.f32.xlu1 %v255_v5  ;;  %v258_v8 = vsel %vm236_vm0, %v662_v6, -inf  ;;  %v210_v11 = vld [vmem:[%s200_s28] sm:$0xff]  ;;  %v213_v12 = vld [vmem:[%s200_s28 + $0x18] sm:$0xff]  ;;  %s533_s22 = scalar_lea.vmem %s532_s21, 256 }
  0x1b   : > { %p535_p1 = scmp.lt.s32.totalorder %s533_s22, %s527_s17 }
  0x1d   : > { %p536_p2 = por %p535_p1, %p534_p0 }
  0x1e   : > { %253 = vmax.xlane.f32.xlu0 %v252_v7  ;;  %259 = vmax.xlane.f32.xlu1 %v258_v8 }
  0x1f   : > { %p537_p3 = pnand %p536_p2, %p530_p13 }
  0x2f   : > { %220 = vperm.xlu1 %502, %v211_v9  }
  0x33   : > { %223 = vperm.xlu1 %502, %v212_v10  }
  0x34   : > { %217 = vperm.xlu0 %501, %v210_v11  }
  0x37   : > { %226 = vperm.xlu1 %502, %v213_v12  }
  0xa7   : > { %v251_v13 = vpop.xlane.xlu0 %250  ;;  %v670_v14 = vpop.xlane.xlu1 %256 }
  0xa8   : > { %v261_v15 = vsub.f32 %v206_v1, %v251_v13  ;;  %v263_v16 = vsub.f32 %v208_v2, %v670_v14 }
  0xaa   : > { %v265_v17 = vmul.f32 1.442695, %v261_v15  ;;  %v269_v18 = vmul.f32 1.442695, %v263_v16 }
  0xab   : > { %v673_v19 = vpop.xlane.xlu0 %253  ;;  %v675_v20 = vpop.xlane.xlu1 %259 }
  0xac   : > { %503 = vpow2.f32 %v265_v17  ;;  %v262_v21 = vsub.f32 %v207_v3, %v673_v19  ;;  %v264_v22 = vsub.f32 %v662_v6, %v675_v20  ;;  %v334_v17 = vshrl.u32 %v214_v26, 7 }
  0xad   : > { %505 = vpow2.f32 %v269_v18 }
  0xae   : > { %v267_v23 = vmul.f32 1.442695, %v262_v21  ;;  %v271_v24 = vmul.f32 1.442695, %v264_v22 }
  0xaf   : > { %v221_v25 = vpop.permute.xlu1 %220 }
  0xb0   : > { %507 = vpow2.f32 %v267_v23  ;;  %vm229_vm3 = vcmp.eq.s32.totalorder %v215_v27, %v221_v25  ;;  %v335_v23 = vadd.s32 8, %v334_v17 }
  0xb1   : > { %509 = vpow2.f32 %v271_v24  ;;  %v233_v43 = vsel %vm229_vm3, %v207_v3, 0.0  ;;  %v339_v24 = vstv %s456_s29 }
  0xb2   : > { %v240_v44 = vsel %vm236_vm0, %v233_v43, 0.0 }
  0xb3   : > { %v224_v29 = vpop.permute.xlu1 %223  ;;  %v218_v32 = vpop.permute.xlu0 %217 }
  0xb4   : > { %vm230_vm1 = vcmp.eq.s32.totalorder %v215_v27, %v224_v29  ;;  %vm228_vm2 = vcmp.eq.s32.totalorder %v215_v27, %v218_v32  ;;  %v337_v32 = vadd.s32 24, %v334_v17 }
  0xb5   : > { %v234_v35 = vsel %vm230_vm1, %v208_v2, 0.0  ;;  %v232_v40 = vsel %vm228_vm2, %v206_v1, 0.0 }
  0xb6   : > { %v504_v28 = vpop.eup %503  ;;  %v243_v39 = vsel %vm236_vm0, %v234_v35, 0.0  ;;  %v237_v41 = vsel %vm236_vm0, %v232_v40, 0.0  ;;  %v341_v35 = vadd.s32 %v339_v24, %v335_v23 }
  0xb7   : > { %v506_v30 = vpop.eup %505  ;;  %v273_v31 = vsel %vm236_vm0, %v504_v28, 0.0  ;;  %v227_v42 = vpop.permute.xlu1 %226 }
  0xb8   : > { %274 = vadd.xlane.f32.xlu1 %v273_v31  ;;  %v279_v33 = vsel %vm236_vm0, %v506_v30, 0.0  ;;  %vm231_vm4 = vcmp.eq.s32.totalorder %v215_v27, %v227_v42  ;;  %v336_v27 = vadd.s32 16, %v334_v17  ;;  %v343_v42 = vadd.s32 %v339_v24, %v337_v32 }
  0xb9   : > { %v235_v45 = vsel %vm231_vm4, %v662_v6, 0.0  ;;  %vm345_vm6 = vcmp.lt.s32.totalorder %v341_v35, 100 }
  0xba   : > { %v508_v34 = vpop.eup %507  ;;  %v246_v46 = vsel %vm236_vm0, %v235_v45, 0.0  ;;  %vm347_vm8 = vcmp.lt.s32.totalorder %v343_v42, 100 }
  0xbb   : > { %v510_v36 = vpop.eup %509  ;;  %v276_v37 = vsel %vm236_vm0, %v508_v34, 0.0 }
  0xbc   : > { %280 = vadd.xlane.f32.xlu1 %v279_v33  ;;  %277 = vadd.xlane.f32.xlu0 %v276_v37  ;;  %v282_v38 = vsel %vm236_vm0, %v510_v36, 0.0  ;;  %v340_v33 = vadd.s32 %v339_v24, %v334_v17  ;;  %v342_v37 = vadd.s32 %v339_v24, %v336_v27 }
  0xbe   : > { %vm344_vm5 = vcmp.lt.s32.totalorder %v340_v33, 100  ;;  %vm346_vm7 = vcmp.lt.s32.totalorder %v342_v37, 100 }
  0xc0   : > { %283 = vadd.xlane.f32.xlu1 %v282_v38  ;;  %244 = vadd.xlane.f32.xlu0 %v243_v39 }
  0xc4   : > { %238 = vadd.xlane.f32.xlu1 %v237_v41 }
  0xc8   : > { %241 = vadd.xlane.f32.xlu1 %v240_v44 }
  0xcc   : > { %247 = vadd.xlane.f32.xlu1 %v246_v46 }
 0x145   : > { %v275_v47 = vpop.xlane.xlu1 %274 }
 0x146   : > { %511 = vlog2.f32 %v275_v47 }
 0x149   : > { %v281_v48 = vpop.xlane.xlu1 %280  ;;  %v278_v49 = vpop.xlane.xlu0 %277 }
 0x14a   : > { %513 = vlog2.f32 %v281_v48 }
 0x14b   : > { %515 = vlog2.f32 %v278_v49 }
 0x14d   : > { %v284_v50 = vpop.xlane.xlu1 %283  ;;  %v245_v0 = vpop.xlane.xlu0 %244 }
 0x14e   : > { %517 = vlog2.f32 %v284_v50 }
 0x150   : > { %v512_v51 = vpop.eup %511 }
 0x151   : > { %v286_v52 = vmul.f32 0.6931472, %v512_v51  ;;  %v239_v53 = vpop.xlane.xlu1 %238 }
 0x153   : > { %v293_v54 = vadd.f32 %v286_v52, %v251_v13 }
 0x154   : > { %v514_v55 = vpop.eup %513 }
 0x155   : > { %v516_v56 = vpop.eup %515  ;;  %v290_v57 = vmul.f32 0.6931472, %v514_v55  ;;  %v297_v58 = vsub.f32 %v293_v54, %v239_v53  ;;  %v242_v60 = vpop.xlane.xlu1 %241 }
 0x156   : > { %v288_v59 = vmul.f32 0.6931472, %v516_v56 }
 0x157   : > { %v301_v61 = vsub.f32 0.0, %v297_v58  ;;  %v295_v62 = vadd.f32 %v290_v57, %v670_v14 }
 0x158   : > { %v518_v63 = vpop.eup %517  ;;  %v294_v1 = vadd.f32 %v288_v59, %v673_v19 }
 0x159   : > { %v292_v2 = vmul.f32 0.6931472, %v518_v63  ;;  %v305_v3 = vmul.f32 1.442695, %v301_v61  ;;  %v299_v4 = vsub.f32 %v295_v62, %v245_v0  ;;  %v248_v9 = vpop.xlane.xlu1 %247 }
 0x15a   : > { %v298_v5 = vsub.f32 %v294_v1, %v242_v60 }
 0x15b   : > { %519 = vpow2.f32 %v305_v3  ;;  %v303_v6 = vsub.f32 0.0, %v299_v4  ;;  %v296_v7 = vadd.f32 %v292_v2, %v675_v20 }
 0x15c   : > { %v302_v8 = vsub.f32 0.0, %v298_v5 }
 0x15d   : > { %v309_v10 = vmul.f32 1.442695, %v303_v6  ;;  %v300_v11 = vsub.f32 %v296_v7, %v248_v9 }
 0x15e   : > { %v307_v12 = vmul.f32 1.442695, %v302_v8 }
 0x15f   : > { %521 = vpow2.f32 %v309_v10  ;;  %v304_v13 = vsub.f32 0.0, %v300_v11 }
 0x160   : > { %523 = vpow2.f32 %v307_v12 }
 0x161   : > { %v311_v14 = vmul.f32 1.442695, %v304_v13 }
 0x163   : > { %525 = vpow2.f32 %v311_v14 }
 0x165   : > { %v520_v15 = vpop.eup %519 }
 0x166   : > { %v313_v16 = vsub.f32 1.0, %v520_v15 }
 0x168   : > { %v317_v18 = vmax.f32 %v313_v16, 0.0 }
 0x169   : > { %v522_v19 = vpop.eup %521 }
 0x16a   : > { %v524_v21 = vpop.eup %523  ;;  %v321_v22 = vmul.f32 %v317_v18, %v317_v18  ;;  %v315_v20 = vsub.f32 1.0, %v522_v19 }
 0x16b   : > { %v314_v25 = vsub.f32 1.0, %v524_v21 }
 0x16c   : > { %v319_v28 = vmax.f32 %v315_v20, 0.0  ;;  %v325_v30 = vmul.f32 %v321_v22, %v317_v18 }
 0x16d   : > { %v526_v29 = vpop.eup %525  ;;  %v318_v31 = vmax.f32 %v314_v25, 0.0 }
 0x16e   : > { %v323_v34 = vmul.f32 %v319_v28, %v319_v28  ;;  %v316_v36 = vsub.f32 1.0, %v526_v29  ;;  %v329_v40 = vmul.f32 %v325_v30, %v297_v58 }
 0x16f   : > { %v322_v26 = vmul.f32 %v318_v31, %v318_v31 }
 0x170   : > { %v327_v38 = vmul.f32 %v323_v34, %v319_v28  ;;  %v320_v39 = vmax.f32 %v316_v36, 0.0  ;;  %v348_v47 = vsel %vm344_vm5, %v329_v40, 0.0 }
 0x171   : > { %v326_v41 = vmul.f32 %v322_v26, %v318_v31 }
 0x172   : > { %v324_v43 = vmul.f32 %v320_v39, %v320_v39  ;;  %v331_v44 = vmul.f32 %v327_v38, %v299_v4 }
 0x173   : > { %v330_v45 = vmul.f32 %v326_v41, %v298_v5 }
 0x174   : > { %v328_v46 = vmul.f32 %v324_v43, %v320_v39  ;;  %v350_v51 = vsel %vm346_vm7, %v331_v44, 0.0 }
 0x175   : > { %v349_v48 = vsel %vm345_vm6, %v330_v45, 0.0 }
 0x176   : > { %v352_v49 = vadd.f32 %v349_v48, %v348_v47  ;;  %v332_v50 = vmul.f32 %v328_v46, %v300_v11 }
 0x178   : > { %v351_v52 = vsel %vm347_vm8, %v332_v50, 0.0  ;;  %v353_v53 = vadd.f32 %v352_v49, %v350_v51 }
 0x17a   : > { %v354_v54 = vadd.f32 %v353_v53, %v351_v52 }
 0x17c   : > { %v355_v55 = vrot.slane %v354_v54, 4 }
 0x17e   : > { %v356_v56 = vadd.f32 %v355_v55, %v354_v54 }
 0x180   : > { %v357_v57 = vrot.slane %v356_v56, 2 }
 0x182   : > { %v358_v58 = vadd.f32 %v357_v57, %v356_v56 }
 0x184   : > { %v359_v59 = vrot.slane %v358_v58, 1 }
 0x186   : > { %v360_v60 = vadd.f32 %v359_v59, %v358_v58 }
 0x188   : > { %361 = vst [vmem:[%s177_s5] sm:$0xff] %v360_v60 }
 0x189   : > { %540 = shalt.err (!%p537_p3)
}
 0x18a   : > { %s541_s23 = scalar_lea.hbm %s700_s14, 128  ;;  %s545_s26 = scalar_lea.hbm %s744_s2, 512 }
 0x18b   : > { %p542_p4 = scmp.ne.s32.totalorder %s700_s14, %s541_s23  ;;  %p546_p9 = scmp.lt.u32.totalorder %s700_s14, %s744_s2 }
 0x18c   : > { %p547_p10 = scmp.lt.u32.totalorder %s545_s26, %s541_s23  ;;  %p549_p12 = scmp.lt.u32.totalorder %s541_s23, %s700_s14 }
 0x18d   : > { %p543_p7 = pnand %p542_p4, %p646_p5 }
 0x18e   : > { %p548_p11 = por %p547_p10, %p546_p9 }
 0x18f   : > { %p544_p8 = pneg %p543_p7 }
 0x190   : > { %p550_p13 = por %p549_p12, %p548_p11 }
 0x192   : > { %p551_p0 = pnand %p550_p13, %p544_p8 }
 0x194   : > { %554 = shalt.err (!%p551_p0)
}
 0x195   : > { %461 = dma.vmem_to_hbm [thread:$0]  (%p646_p5), %s702_s6, 128, %s700_s14, %s363_s16  }
 0x196 PF: > { %p467_p1 = scmp.ge.s32.totalorder %s589_s12, 2  ;;  %s388_s29 = sand.u32 1, %s577_s9  }
 0x197   : > { %s389_s30 = scalar_lea.sflag [#allocation3], %s388_s29 }
 0x198   : > { %p464_p2 = pnand %p467_p1, %p650_p6 }
 0x19a   : > { %572 = dma.done.wait (!%p464_p2), %s389_s30, 128  }
 0x19b   : > { %574 = vsyncadd (!%p464_p2), %s389_s30, 4294967168  ;;  %p12_p3 = scmp.ge.s32.totalorder %s633_s15, 6   ;;  %s747_s9 = smov %s581_s10 }
 0x19c   : > { %s748_s10 = smov %s585_s11  ;;  %s749_s11 = smov %s644_s18 }
 0x19d   : > { %s750_s12 = smov %s633_s15  ;;  %14 = sbr.rel (!%p12_p3) target bundleno = 3 (0x3), region = 66 }
 0x1a4   :  { %394 = vsyncpa [#allocation3], 1 }
 0x1a5   :  { %396 = vsyncpa [#allocation3 + $0x1], 1 }

</bundles_post_ra>
